<compile_context>
chip_gen: v5e
topology: v5e:2x2
jax: 0.10.0
libtpu: 0.0.40
codegen_flags: <defaults>
</compile_context>

<pallas_src>
import functools
import math

import jax
import jax.numpy as jnp
from jax import lax
from jax.experimental import pallas as pl
from jax.experimental.pallas import tpu as pltpu


def _round_up(x, m):
    return (x + m - 1) // m * m


def _lora_gather_vmem_kernel(ids_ref, w_ref, a_ref, b_ref, o_ref, a_rows, *, tile):
    """Small-table fast path: whole embedding table resident in VMEM."""
    base = pl.program_id(0) * tile

    # Gather weight rows straight into the output block and LoRA-A rows into
    # the (tile, r) scratch, both with in-VMEM dynamic slices (no DMA).
    @pl.loop(0, tile)
    def _(t):
        row = ids_ref[base + t]
        o_ref[pl.ds(t, 1), :] = w_ref[pl.ds(row, 1), :]
        a_rows[pl.ds(t, 1), :] = a_ref[pl.ds(row, 1), :].astype(jnp.float32)

    # Tiny (tile, r) @ (r, D) matmul; r is intentionally NOT padded.
    delta = jnp.dot(a_rows[...], b_ref[...], preferred_element_type=jnp.float32)
    o_ref[...] = (o_ref[...].astype(jnp.float32) + delta).astype(o_ref.dtype)


def _lora_gather_hbm_kernel(ids_ref, w_hbm, a_ref, b_ref, o_ref, a_rows, sem, *, tile):
    """General path: per-row DMA gather from the HBM table directly into o_ref."""
    base = pl.program_id(0) * tile

    # Issue all row DMAs for this tile, landing directly in the pipelined
    # output block (no VMEM landing buffer).  Unrolled so the SMEM id load +
    # address math co-issue with the 1-per-cycle misc-slot descriptor push.
    def _issue(t, carry):
        row = ids_ref[base + t]
        pltpu.make_async_copy(
            w_hbm.at[pl.ds(row, 1), :],
            o_ref.at[pl.ds(t, 1), :],
            sem,
        ).start()
        return carry

    lax.fori_loop(0, tile, _issue, 0, unroll=8)

    # LoRA-A gather + the tiny matmul overlap the in-flight row DMAs.
    @pl.loop(0, tile)
    def _(t):
        row = ids_ref[base + t]
        a_rows[pl.ds(t, 1), :] = a_ref[pl.ds(row, 1), :].astype(jnp.float32)

    delta = jnp.dot(a_rows[...], b_ref[...], preferred_element_type=jnp.float32)

    # Wait for every row copy.  All DMAs on this shared semaphore have the
    # identical (1, D) shape and dtype, so the re-built wait descriptors
    # (real destination, dummy source row) match the issued sizes exactly.
    @pl.loop(0, tile)
    def _(t):
        pltpu.make_async_copy(
            w_hbm.at[pl.ds(0, 1), :],
            o_ref.at[pl.ds(t, 1), :],
            sem,
        ).wait()

    o_ref[...] = (o_ref[...].astype(jnp.float32) + delta).astype(o_ref.dtype)


def lora_embedding(x, weight, lora_a, lora_b, scaling, *, tile=256, table_in_vmem=None):
    """x: int ids (any shape); weight: (V, D); lora_a: (r, V); lora_b: (D, r).

    Returns x.shape + (D,) in weight.dtype.
    """
    V, D = weight.shape
    r = lora_a.shape[0]
    out_dtype = weight.dtype
    itemsize = jnp.dtype(out_dtype).itemsize

    # Per-call prep is only O(V*r + r*D); the V x D table is never rewritten.
    a_t = lora_a.T                                                   # (V, r)
    b_scaled = lora_b.T.astype(jnp.float32) * jnp.float32(scaling)   # (r, D)

    # Flatten ids; clamp so an out-of-range id can never produce an OOB DMA.
    # TODO(synk): PyTorch raises on out-of-range ids; here they are clamped.
    orig_shape = x.shape
    N = math.prod(orig_shape)
    ids = jnp.clip(x.reshape(N).astype(jnp.int32), 0, V - 1)

    # Token tiling: sublane-aligned (multiple of 16 covers f32 and bf16); pad
    # only when needed so the aligned case has no post-kernel slice pass.
    tile = max(16, _round_up(int(tile), 16))
    tile = min(tile, _round_up(N, 16))
    Np = _round_up(N, tile)
    if Np != N:
        ids = jnp.pad(ids, (0, Np - N))
    grid = (Np // tile,)

    # Small-table fast path: keep the whole table resident in VMEM (per-row
    # HBM DMAs of tiny rows are descriptor-issue bound).  Threshold is
    # conservative for v7x's 64 MiB VMEM (double-buffered BlockSpec input).
    if table_in_vmem is None:
        table_in_vmem = 2 * V * max(D, 128) * itemsize <= 16 * 2**20

    # VMEM budget estimate (double buffers + scratch), with headroom.
    lane = 128
    a_res_bytes = V * lane * 4                                # lane-padded (V, r)
    b_res_bytes = max(r, 8) * max(D, lane) * 4
    out_bytes = tile * max(D, lane) * itemsize
    w_res_bytes = V * max(D, lane) * itemsize if table_in_vmem else 0
    need = 2 * (a_res_bytes + b_res_bytes + out_bytes + w_res_bytes) + tile * lane * 4
    vmem_limit = int(min(max(2 * need, 32 * 2**20), 100 * 2**20))

    common_in_specs = [
        pl.BlockSpec((V, r), lambda i, ids_sm: (0, 0)),   # lora_a.T resident in VMEM
        pl.BlockSpec((r, D), lambda i, ids_sm: (0, 0)),   # scaled lora_b.T resident
    ]
    scratch = [pltpu.VMEM((tile, r), jnp.float32)]        # gathered LoRA-A rows

    if table_in_vmem:
        kernel = functools.partial(_lora_gather_vmem_kernel, tile=tile)
        in_specs = [pl.BlockSpec((V, D), lambda i, ids_sm: (0, 0))] + common_in_specs
    else:
        kernel = functools.partial(_lora_gather_hbm_kernel, tile=tile)
        in_specs = [pl.BlockSpec(memory_space=pl.ANY)] + common_in_specs
        scratch = scratch + [pltpu.SemaphoreType.DMA(())]

    out = pl.pallas_call(
        kernel,
        out_shape=jax.ShapeDtypeStruct((Np, D), out_dtype),
        grid_spec=pltpu.PrefetchScalarGridSpec(
            num_scalar_prefetch=1,                        # ids -> SMEM
            grid=grid,
            in_specs=in_specs,
            out_specs=pl.BlockSpec((tile, D), lambda i, ids_sm: (i, 0)),
            scratch_shapes=scratch,
        ),
        compiler_params=pltpu.CompilerParams(
            dimension_semantics=("parallel",),            # megacore split on v7x
            vmem_limit_bytes=vmem_limit,
        ),
    )(ids, weight, a_t, b_scaled)

    if Np != N:
        out = out[:N]
    return out.reshape(orig_shape + (D,))


if __name__ == "__main__":
    # Module hyper-params (small, synthetic).
    num_embeddings, embedding_dim, r, alpha = 64, 32, 8, 16
    scaling = alpha / r

    key = jax.random.PRNGKey(0)
    k_w, k_a, k_b, k_x = jax.random.split(key, 4)
    weight = jax.random.normal(k_w, (num_embeddings, embedding_dim), jnp.float32)
    lora_a = jax.random.normal(k_a, (r, num_embeddings), jnp.float32)
    # The module zero-inits lora_b; use a nonzero value so the LoRA path is
    # actually exercised by the correctness check.
    lora_b = 0.1 * jax.random.normal(k_b, (embedding_dim, r), jnp.float32)

    B, S = 2, 8
    x = jax.random.randint(k_x, (B, S), 0, num_embeddings, dtype=jnp.int32)

    # Pure-JAX reference mirroring the PyTorch forward.
    ref = jnp.take(weight, x, axis=0) + scaling * jnp.dot(
        jnp.take(lora_a.T, x, axis=0), lora_b.T,
        precision=jax.lax.Precision.HIGHEST)

    # Exercise both the VMEM-resident-table path and the HBM DMA-gather path.
    for table_in_vmem in (True, False):
        out = lora_embedding(x, weight, lora_a, lora_b, scaling,
                             tile=256, table_in_vmem=table_in_vmem)
        out = jax.block_until_ready(out)
        assert out.shape == (B, S, embedding_dim), out.shape
        assert out.dtype == weight.dtype, out.dtype
        err = float(jnp.max(jnp.abs(out.astype(jnp.float32) - ref)))
        assert err < 5e-3, (table_in_vmem, err)

    print("KERNEL_OK")
</pallas_src>

<mosaic_0001>
module attributes {stable_mosaic.version = 11 : i64} {
  func.func @_lora_gather_vmem_kernel(%arg0: i32, %arg1: memref<16xi32, #tpu.memory_space<smem>>, %arg2: memref<64x32xf32, #tpu.memory_space<vmem>>, %arg3: memref<64x8xf32, #tpu.memory_space<vmem>>, %arg4: memref<8x32xf32, #tpu.memory_space<vmem>>, %arg5: memref<16x32xf32, #tpu.memory_space<vmem>>, %arg6: memref<16x8xf32, #tpu.memory_space<vmem>>) attributes {dimension_semantics = [#tpu.dimension_semantics<parallel>], iteration_bounds = array<i64: 1>, scalar_prefetch = 1 : i64, scratch_operands = 1 : i64, tpu.core_type = #tpu.core_type<tc>, window_params = [{pipeline_mode = #tpu.pipeline_mode<synchronous>, transform_indices = @transform_0, window_bounds = array<i64: 64, 32>}, {pipeline_mode = #tpu.pipeline_mode<synchronous>, transform_indices = @transform_1, window_bounds = array<i64: 64, 8>}, {pipeline_mode = #tpu.pipeline_mode<synchronous>, transform_indices = @transform_2, window_bounds = array<i64: 8, 32>}, {transform_indices = @transform_3, window_bounds = array<i64: 16, 32>}]} {
    %c16_i32 = arith.constant 16 : i32
    %0 = arith.muli %arg0, %c16_i32 : i32
    %c0_i32 = arith.constant 0 : i32
    %c16_i32_0 = arith.constant 16 : i32
    %1 = arith.addi %c0_i32, %c16_i32_0 : i32
    %c1_i32 = arith.constant 1 : i32
    scf.for %arg7 = %c0_i32 to %1 step %c1_i32  : i32 {
      %c1_i32_9 = arith.constant 1 : i32
      %8 = arith.muli %arg7, %c1_i32_9 : i32
      %c0_i32_10 = arith.constant 0 : i32
      %9 = arith.addi %c0_i32_10, %8 : i32
      %10 = arith.addi %0, %9 : i32
      %11 = arith.index_cast %10 : i32 to index
      %12 = memref.load %arg1[%11] : memref<16xi32, #tpu.memory_space<smem>>
      %13 = arith.index_cast %12 : i32 to index
      %c0_11 = arith.constant 0 : index
      %14 = vector.load %arg2[%13, %c0_11] : memref<64x32xf32, #tpu.memory_space<vmem>>, vector<1x32xf32>
      %15 = arith.index_cast %9 : i32 to index
      %c0_12 = arith.constant 0 : index
      %16 = vector.load %arg5[%15, %c0_12] : memref<16x32xf32, #tpu.memory_space<vmem>>, vector<1x32xf32>
      tpu.vector_store %arg5[%15, %c0_12], %14 {strides = array<i32>} : memref<16x32xf32, #tpu.memory_space<vmem>>, vector<1x32xf32>,
      %17 = arith.index_cast %12 : i32 to index
      %c0_13 = arith.constant 0 : index
      %18 = vector.load %arg3[%17, %c0_13] : memref<64x8xf32, #tpu.memory_space<vmem>>, vector<1x8xf32>
      %19 = arith.index_cast %9 : i32 to index
      %c0_14 = arith.constant 0 : index
      %20 = vector.load %arg6[%19, %c0_14] : memref<16x8xf32, #tpu.memory_space<vmem>>, vector<1x8xf32>
      tpu.vector_store %arg6[%19, %c0_14], %18 {strides = array<i32>} : memref<16x8xf32, #tpu.memory_space<vmem>>, vector<1x8xf32>,
    }
    %c16_i32_1 = arith.constant 16 : i32
    %c0 = arith.constant 0 : index
    %c0_2 = arith.constant 0 : index
    %2 = vector.load %arg6[%c0, %c0_2] : memref<16x8xf32, #tpu.memory_space<vmem>>, vector<16x8xf32>
    %c0_3 = arith.constant 0 : index
    %c0_4 = arith.constant 0 : index
    %3 = vector.load %arg4[%c0_3, %c0_4] : memref<8x32xf32, #tpu.memory_space<vmem>>, vector<8x32xf32>
    %cst = arith.constant dense<0.000000e+00> : vector<16x32xf32>
    %4 = tpu.matmul %2, %3, %cst {dimension_numbers = #tpu.dot_dimension_numbers<[1], [0], [0], [1], [0, 0, 1, 1], [], []>} : vector<16x8xf32>, vector<8x32xf32>, vector<16x32xf32> -> vector<16x32xf32>
    %c0_5 = arith.constant 0 : index
    %c0_6 = arith.constant 0 : index
    %5 = vector.load %arg5[%c0_5, %c0_6] : memref<16x32xf32, #tpu.memory_space<vmem>>, vector<16x32xf32>
    %6 = arith.addf %5, %4 : vector<16x32xf32>
    %c0_7 = arith.constant 0 : index
    %c0_8 = arith.constant 0 : index
    %7 = vector.load %arg5[%c0_7, %c0_8] : memref<16x32xf32, #tpu.memory_space<vmem>>, vector<16x32xf32>
    tpu.vector_store %arg5[%c0_7, %c0_8], %6 {strides = array<i32>} : memref<16x32xf32, #tpu.memory_space<vmem>>, vector<16x32xf32>,
    return
  }
  func.func @transform_0(%arg0: i32, %arg1: memref<16xi32, #tpu.memory_space<smem>>) -> (i32, i32) {
    %c0_i32 = arith.constant 0 : i32
    %c0_i32_0 = arith.constant 0 : i32
    %c0_i32_1 = arith.constant 0 : i32
    return %c0_i32, %c0_i32_0 : i32, i32
  }
  func.func @transform_1(%arg0: i32, %arg1: memref<16xi32, #tpu.memory_space<smem>>) -> (i32, i32) {
    %c0_i32 = arith.constant 0 : i32
    %c0_i32_0 = arith.constant 0 : i32
    %c0_i32_1 = arith.constant 0 : i32
    return %c0_i32, %c0_i32_0 : i32, i32
  }
  func.func @transform_2(%arg0: i32, %arg1: memref<16xi32, #tpu.memory_space<smem>>) -> (i32, i32) {
    %c0_i32 = arith.constant 0 : i32
    %c0_i32_0 = arith.constant 0 : i32
    %c0_i32_1 = arith.constant 0 : i32
    return %c0_i32, %c0_i32_0 : i32, i32
  }
  func.func @transform_3(%arg0: i32, %arg1: memref<16xi32, #tpu.memory_space<smem>>) -> (i32, i32) {
    %c0_i32 = arith.constant 0 : i32
    %c0_i32_0 = arith.constant 0 : i32
    return %arg0, %c0_i32 : i32, i32
  }
}

</mosaic_0001>

<bundles_post_ra>
// kernel: tpu_custom_call.1
= control target key start
LH: loop header
LB: loop body
LE: loop exit
PB: predicated region body
PF: predicated region fallthrough
CT: control target
= control target key end

     0   :  { %s173_s18 = smov [#allocation4]   ;;  %s217_s0 = inlined_call_operand.vmem [shape: s32[16], index: 0, kind: input, shape index: {}]   ;;  %s218_s1 = inlined_call_operand.vmem [shape: f32[64,32], index: 1, kind: input, shape index: {}]   ;;  %s219_s2 = inlined_call_operand.vmem [shape: f32[64,8], index: 2, kind: input, shape index: {}]   ;;  %s220_s3 = inlined_call_operand.vmem [shape: f32[8,32], index: 3, kind: input, shape index: {}]   ;;  %s221_s4 = inlined_call_operand.hbm [shape: f32[16,32], index: 4, kind: output, shape index: {}]  }
   0x1   :  { %s10_s17 = sshll.u32 %s217_s0, 4  ;;  %s11_s17 = int_to_ptr.vmem [resolvable:$true] %s10_s17 }
   0x2   :  { %13 = dma.vmem_to_smem %s11_s17, 16, %s173_s18, [#allocation3] }
   0x3   :  { %165 = dma.done.wait [#allocation3], 16 }
   0x4   :  { %166 = vsyncadd [#allocation3], 4294967280 }
   0x5   :  { %16 = sfence }
   0x6   :  { %17 = vsyncpa [#allocation6], 0  ;;  %s169_s19 = smov 0  }
   0x7 LB: > { %s32_s20 = sld [smem:[#allocation4 + %s171_s19]]  ;;  %vm36_vm0 = vcmask 253952   ;;  %vm41_vm1 = vcmask 57344   ;;  %s35_s26 = scalar_lea.vmem [#allocation5], %s171_s19  ;;  %s171_s19 = sphi %s169_s19, %s30_s19  }
   0x8   : > { %s40_s27 = scalar_lea.vmem [#allocation2], %s171_s19  ;;  %s30_s19 = sadd.s32 1, %s171_s19  }
   0x9   : > { %p27_p0 = scmp.ge.s32.totalorder %s30_s19, 16  }
   0xa   :  { %v45_v2 = vld [vmem:[%s220_s3] sm:$0xff] (%p27_p0)  ;;  %vm46_vm2 = vcmask (%p27_p0), 64512   ;;  %s174_s30 = smov (%p27_p0), [#allocation5]   ;;  %s89_s8 = sshll.u32 (%p27_p0), %s221_s4, 4  ;;  %vm80_vm3 = vcmask (%p27_p0), 261120   ;;  %s90_s8 = int_to_ptr.hbm [resolvable:$true] %s89_s8 }
   0xb   :  { %68 = vmatpush.msra.mxu0 (%p27_p0), %v45_v2  ;;  %112 = vmatpush.msra.mxu1 (%p27_p0), %v45_v2  ;;  %s87_s5 = sshll.u32 (%p27_p0), %s174_s30, 4  ;;  %s88_s5 = int_to_ptr.vmem [resolvable:$true] %s87_s5 }
   0xc   :  { %29 = sbr.rel (!%p27_p0) target bundleno = 7 (0x7), region = 43 }
   0xd   : > { %s33_s23 = scalar_lea.vmem %s218_s1, %s32_s20  ;;  %s38_s0 = scalar_lea.vmem %s219_s2, %s32_s20 }
   0xe   : > { %v34_v0 = vld [vmem:[%s33_s23] sm:$0x1]  ;;  %s175_s1 = smov (%p27_p0), 128   ;;  %s176_s2 = smov (%p27_p0), 8  }
   0xf   : > { %v39_v1 = vld [vmem:[%s38_s0] sm:$0x1]  ;;  %37 = vst.msk [vmem:[%s35_s26] sm:$0x1] %vm36_vm0, %v34_v0 }
  0x10   : > { %42 = vst.msk [vmem:[%s40_s27] sm:$0x1] %vm41_vm1, %v39_v1 }
  0x16   :  { %v76_v5 = vld [vmem:[#allocation5] sm:$0xff]  ;;  %v77_v6 = vld [vmem:[#allocation5 + $0x8] sm:$0xff] }
  0x17   :  { %v43_v3 = vld [vmem:[#allocation2] sm:$0xff]  ;;  %v44_v4 = vld [vmem:[#allocation2 + $0x8] sm:$0xff] }
  0x18   :  { %110 = vmatmul.msk.f32.vlgmr.msra.gmra.mxu0 %vm46_vm2, %v43_v3  ;;  %111 = vmatmul.msk.f32.vlgmr.msra.gmra.mxu1 %vm46_vm2, %v44_v4 }
  0x95   :  { %v70_v7 = vpop.f32.mrf.mxu0  ;;  %v73_v8 = vpop.f32.mrf.mxu1 }
  0x96   :  { %v78_v9 = vadd.f32 %v76_v5, %v70_v7  ;;  %v79_v10 = vadd.f32 %v77_v6, %v73_v8 }
  0x98   :  { %81 = vst.msk [vmem:[#allocation5] sm:$0xff] %vm80_vm3, %v78_v9 }
  0x99   :  { %82 = vst.msk [vmem:[#allocation5 + $0x8] sm:$0xff] %vm80_vm3, %v79_v10 }
  0x9a   :  { %95 = dma.vmem_to_hbm [thread:$0]  %s88_s5, 256, %s90_s8, [#allocation6], %s175_s1, %s175_s1, %s176_s2  }
  0x9b   :  { %167 = dma.done.wait [#allocation6], 256  }
  0x9c   :  { %168 = vsyncadd [#allocation6], 4294967040 }
  0x9d   :  { %100 = vsyncpa [#allocation6], 1 }

</bundles_post_ra>
